<compile_context>
chip_gen: v7x
topology: tpu7x:2x2x1
jax: 0.10.0
libtpu: 0.0.40
codegen_flags: <defaults>
</compile_context>

<pallas_src>
import numpy as np
import jax
import jax.numpy as jnp
from jax.experimental import pallas as pl
from jax.experimental.pallas import tpu as pltpu

NUM_LAYERS = 2
INPUT_SIZE = 200          # Highway(input_size=200) default


def _round_up(x, m):
    return ((x + m - 1) // m) * m


def highway_kernel(x_ref, wd_ref, bd_ref, wg_ref, bg_ref, out_ref):
    # x_ref:  (TN, HP)        activations tile (padded feature dim)
    # wd_ref: (L, HP, HP)     dense weights, stored as (in, out) i.e. W^T
    # bd_ref: (L, 1, HP)      dense biases
    # wg_ref: (L, HP, HP)     gate weights (in, out)
    # bg_ref: (L, 1, HP)      gate biases
    # out_ref:(TN, HP)
    x = x_ref[...]
    num_layers = wd_ref.shape[0]
    for l in range(num_layers):                       # static unroll (L=2)
        zg = jnp.dot(x, wg_ref[l], preferred_element_type=jnp.float32)
        zg = zg + bg_ref[l]
        zd = jnp.dot(x, wd_ref[l], preferred_element_type=jnp.float32)
        zd = zd + bd_ref[l]
        g = jax.nn.sigmoid(zg)
        x = g * jnp.maximum(zd, 0.0) + (1.0 - g) * x
    out_ref[...] = x


def highway_forward(x, params, *, tn=1024):
    """x: float (..., H) -> (..., H), H = INPUT_SIZE."""
    orig_shape = x.shape
    h = orig_shape[-1]
    n = int(np.prod(orig_shape[:-1]))

    hp = _round_up(h, 128)                     # 200 -> 256 (lane-dense)
    tn = max(8, min(tn, _round_up(n, 8)))      # clamp tile for small inputs
    n_pad = _round_up(n, tn)

    x2 = x.reshape(n, h).astype(jnp.float32)
    x_p = jnp.pad(x2, ((0, n_pad - n), (0, hp - h)))

    # Zero-pad stacked weights/biases to the lane-dense feature dim.
    def pad_w(w):   # (L, H, H) -> (L, HP, HP)
        return jnp.pad(w.astype(jnp.float32),
                       ((0, 0), (0, hp - h), (0, hp - h)))

    def pad_b(b):   # (L, 1, H) -> (L, 1, HP)
        return jnp.pad(b.astype(jnp.float32), ((0, 0), (0, 0), (0, hp - h)))

    wd = pad_w(params['w_dense'])
    bd = pad_b(params['b_dense'])
    wg = pad_w(params['w_gate'])
    bg = pad_b(params['b_gate'])
    num_layers = wd.shape[0]

    out = pl.pallas_call(
        highway_kernel,
        out_shape=jax.ShapeDtypeStruct((n_pad, hp), jnp.float32),
        grid_spec=pltpu.PrefetchScalarGridSpec(
            num_scalar_prefetch=0,
            grid=(n_pad // tn,),
            in_specs=[
                pl.BlockSpec((tn, hp), lambda i: (i, 0)),
                pl.BlockSpec((num_layers, hp, hp), lambda i: (0, 0, 0)),
                pl.BlockSpec((num_layers, 1, hp), lambda i: (0, 0, 0)),
                pl.BlockSpec((num_layers, hp, hp), lambda i: (0, 0, 0)),
                pl.BlockSpec((num_layers, 1, hp), lambda i: (0, 0, 0)),
            ],
            out_specs=pl.BlockSpec((tn, hp), lambda i: (i, 0)),
        ),
        compiler_params=pltpu.CompilerParams(
            dimension_semantics=("parallel",)),
    )(x_p, wd, bd, wg, bg)

    return out[:n, :h].reshape(orig_shape)


def reference_forward(x, params):
    """Pure-JAX reference matching the PyTorch module exactly."""
    num_layers = params['w_dense'].shape[0]
    xf = x.astype(jnp.float32)
    for l in range(num_layers):
        zg = xf @ params['w_gate'][l] + params['b_gate'][l][0]
        zd = xf @ params['w_dense'][l] + params['b_dense'][l][0]
        g = jax.nn.sigmoid(zg)
        xf = g * jnp.maximum(zd, 0.0) + (1.0 - g) * xf
    return xf


def init_params(key, num_layers=NUM_LAYERS, h=INPUT_SIZE):
    # nn.Linear(h, h): weight (out, in), bias (out,).  We store the transposed
    # weight (in, out) so the kernel does x @ W.
    keys = jax.random.split(key, 4 * num_layers)
    bound = 1.0 / np.sqrt(h)
    def u(k, shape):
        return jax.random.uniform(k, shape, jnp.float32, -bound, bound)
    w_dense = jnp.stack([u(keys[4 * l + 0], (h, h)) for l in range(num_layers)])
    b_dense = jnp.stack([u(keys[4 * l + 1], (1, h)) for l in range(num_layers)])
    w_gate = jnp.stack([u(keys[4 * l + 2], (h, h)) for l in range(num_layers)])
    b_gate = jnp.stack([u(keys[4 * l + 3], (1, h)) for l in range(num_layers)])
    return {'w_dense': w_dense, 'b_dense': b_dense,
            'w_gate': w_gate, 'b_gate': b_gate}


if __name__ == "__main__":
    key = jax.random.PRNGKey(0)
    pkey, xkey = jax.random.split(key)
    params = init_params(pkey)

    B, S, H = 2, 8, INPUT_SIZE          # batch=2, seq=8, hidden=200
    x = jax.random.normal(xkey, (B, S, H), jnp.float32)

    out = jax.block_until_ready(highway_forward(x, params))
    ref = jax.block_until_ready(reference_forward(x, params))

    assert out.shape == (B, S, H), out.shape
    assert jnp.max(jnp.abs(out - ref)) < 1e-4

    print("KERNEL_OK")
</pallas_src>

<mosaic_0001>
module attributes {stable_mosaic.version = 11 : i64} {
  func.func @highway_kernel(%arg0: i32, %arg1: memref<16x256xf32, #tpu.memory_space<vmem>>, %arg2: memref<2x256x256xf32, #tpu.memory_space<vmem>>, %arg3: memref<2x1x256xf32, #tpu.memory_space<vmem>>, %arg4: memref<2x256x256xf32, #tpu.memory_space<vmem>>, %arg5: memref<2x1x256xf32, #tpu.memory_space<vmem>>, %arg6: memref<16x256xf32, #tpu.memory_space<vmem>>) attributes {dimension_semantics = [#tpu.dimension_semantics<parallel>], iteration_bounds = array<i64: 1>, scalar_prefetch = 0 : i64, scratch_operands = 0 : i64, tpu.core_type = #tpu.core_type<tc>, window_params = [{transform_indices = @transform_0, window_bounds = array<i64: 16, 256>}, {pipeline_mode = #tpu.pipeline_mode<synchronous>, transform_indices = @transform_1, window_bounds = array<i64: 2, 256, 256>}, {pipeline_mode = #tpu.pipeline_mode<synchronous>, transform_indices = @transform_2, window_bounds = array<i64: 2, 1, 256>}, {pipeline_mode = #tpu.pipeline_mode<synchronous>, transform_indices = @transform_3, window_bounds = array<i64: 2, 256, 256>}, {pipeline_mode = #tpu.pipeline_mode<synchronous>, transform_indices = @transform_4, window_bounds = array<i64: 2, 1, 256>}, {transform_indices = @transform_5, window_bounds = array<i64: 16, 256>}]} {
    %c0 = arith.constant 0 : index
    %c0_0 = arith.constant 0 : index
    %0 = vector.load %arg1[%c0, %c0_0] : memref<16x256xf32, #tpu.memory_space<vmem>>, vector<16x256xf32>
    %c0_1 = arith.constant 0 : index
    %c0_2 = arith.constant 0 : index
    %c0_3 = arith.constant 0 : index
    %1 = vector.load %arg4[%c0_1, %c0_2, %c0_3] : memref<2x256x256xf32, #tpu.memory_space<vmem>>, vector<1x256x256xf32>
    %2 = vector.shape_cast %1 : vector<1x256x256xf32> to vector<256x256xf32>
    %cst = arith.constant dense<0.000000e+00> : vector<16x256xf32>
    %3 = tpu.matmul %0, %2, %cst {dimension_numbers = #tpu.dot_dimension_numbers<[1], [0], [0], [1], [0, 0, 1, 1], [], []>} : vector<16x256xf32>, vector<256x256xf32>, vector<16x256xf32> -> vector<16x256xf32>
    %c0_4 = arith.constant 0 : index
    %c0_5 = arith.constant 0 : index
    %c0_6 = arith.constant 0 : index
    %4 = vector.load %arg5[%c0_4, %c0_5, %c0_6] : memref<2x1x256xf32, #tpu.memory_space<vmem>>, vector<1x1x256xf32>
    %5 = vector.shape_cast %4 : vector<1x1x256xf32> to vector<1x256xf32>
    %6 = vector.broadcast %5 : vector<1x256xf32> to vector<16x256xf32>
    %7 = arith.addf %3, %6 : vector<16x256xf32>
    %c0_7 = arith.constant 0 : index
    %c0_8 = arith.constant 0 : index
    %c0_9 = arith.constant 0 : index
    %8 = vector.load %arg2[%c0_7, %c0_8, %c0_9] : memref<2x256x256xf32, #tpu.memory_space<vmem>>, vector<1x256x256xf32>
    %9 = vector.shape_cast %8 : vector<1x256x256xf32> to vector<256x256xf32>
    %cst_10 = arith.constant dense<0.000000e+00> : vector<16x256xf32>
    %10 = tpu.matmul %0, %9, %cst_10 {dimension_numbers = #tpu.dot_dimension_numbers<[1], [0], [0], [1], [0, 0, 1, 1], [], []>} : vector<16x256xf32>, vector<256x256xf32>, vector<16x256xf32> -> vector<16x256xf32>
    %c0_11 = arith.constant 0 : index
    %c0_12 = arith.constant 0 : index
    %c0_13 = arith.constant 0 : index
    %11 = vector.load %arg3[%c0_11, %c0_12, %c0_13] : memref<2x1x256xf32, #tpu.memory_space<vmem>>, vector<1x1x256xf32>
    %12 = vector.shape_cast %11 : vector<1x1x256xf32> to vector<1x256xf32>
    %13 = vector.broadcast %12 : vector<1x256xf32> to vector<16x256xf32>
    %14 = arith.addf %10, %13 : vector<16x256xf32>
    %15 = arith.negf %7 : vector<16x256xf32>
    %16 = math.exp %15 : vector<16x256xf32>
    %cst_14 = arith.constant 1.000000e+00 : f32
    %17 = vector.broadcast %cst_14 : f32 to vector<16x256xf32>
    %18 = arith.addf %17, %16 : vector<16x256xf32>
    %19 = arith.divf %17, %18 : vector<16x256xf32>
    %cst_15 = arith.constant 0.000000e+00 : f32
    %20 = vector.broadcast %cst_15 : f32 to vector<16x256xf32>
    %21 = arith.maximumf %14, %20 : vector<16x256xf32>
    %22 = arith.mulf %19, %21 : vector<16x256xf32>
    %cst_16 = arith.constant 1.000000e+00 : f32
    %23 = vector.broadcast %cst_16 : f32 to vector<16x256xf32>
    %24 = arith.subf %23, %19 : vector<16x256xf32>
    %25 = arith.mulf %24, %0 : vector<16x256xf32>
    %26 = arith.addf %22, %25 : vector<16x256xf32>
    %c1 = arith.constant 1 : index
    %c0_17 = arith.constant 0 : index
    %c0_18 = arith.constant 0 : index
    %27 = vector.load %arg4[%c1, %c0_17, %c0_18] : memref<2x256x256xf32, #tpu.memory_space<vmem>>, vector<1x256x256xf32>
    %28 = vector.shape_cast %27 : vector<1x256x256xf32> to vector<256x256xf32>
    %cst_19 = arith.constant dense<0.000000e+00> : vector<16x256xf32>
    %29 = tpu.matmul %26, %28, %cst_19 {dimension_numbers = #tpu.dot_dimension_numbers<[1], [0], [0], [1], [0, 0, 1, 1], [], []>} : vector<16x256xf32>, vector<256x256xf32>, vector<16x256xf32> -> vector<16x256xf32>
    %c1_20 = arith.constant 1 : index
    %c0_21 = arith.constant 0 : index
    %c0_22 = arith.constant 0 : index
    %30 = vector.load %arg5[%c1_20, %c0_21, %c0_22] : memref<2x1x256xf32, #tpu.memory_space<vmem>>, vector<1x1x256xf32>
    %31 = vector.shape_cast %30 : vector<1x1x256xf32> to vector<1x256xf32>
    %32 = vector.broadcast %31 : vector<1x256xf32> to vector<16x256xf32>
    %33 = arith.addf %29, %32 : vector<16x256xf32>
    %c1_23 = arith.constant 1 : index
    %c0_24 = arith.constant 0 : index
    %c0_25 = arith.constant 0 : index
    %34 = vector.load %arg2[%c1_23, %c0_24, %c0_25] : memref<2x256x256xf32, #tpu.memory_space<vmem>>, vector<1x256x256xf32>
    %35 = vector.shape_cast %34 : vector<1x256x256xf32> to vector<256x256xf32>
    %cst_26 = arith.constant dense<0.000000e+00> : vector<16x256xf32>
    %36 = tpu.matmul %26, %35, %cst_26 {dimension_numbers = #tpu.dot_dimension_numbers<[1], [0], [0], [1], [0, 0, 1, 1], [], []>} : vector<16x256xf32>, vector<256x256xf32>, vector<16x256xf32> -> vector<16x256xf32>
    %c1_27 = arith.constant 1 : index
    %c0_28 = arith.constant 0 : index
    %c0_29 = arith.constant 0 : index
    %37 = vector.load %arg3[%c1_27, %c0_28, %c0_29] : memref<2x1x256xf32, #tpu.memory_space<vmem>>, vector<1x1x256xf32>
    %38 = vector.shape_cast %37 : vector<1x1x256xf32> to vector<1x256xf32>
    %39 = vector.broadcast %38 : vector<1x256xf32> to vector<16x256xf32>
    %40 = arith.addf %36, %39 : vector<16x256xf32>
    %41 = arith.negf %33 : vector<16x256xf32>
    %42 = math.exp %41 : vector<16x256xf32>
    %cst_30 = arith.constant 1.000000e+00 : f32
    %43 = vector.broadcast %cst_30 : f32 to vector<16x256xf32>
    %44 = arith.addf %43, %42 : vector<16x256xf32>
    %45 = arith.divf %43, %44 : vector<16x256xf32>
    %cst_31 = arith.constant 0.000000e+00 : f32
    %46 = vector.broadcast %cst_31 : f32 to vector<16x256xf32>
    %47 = arith.maximumf %40, %46 : vector<16x256xf32>
    %48 = arith.mulf %45, %47 : vector<16x256xf32>
    %cst_32 = arith.constant 1.000000e+00 : f32
    %49 = vector.broadcast %cst_32 : f32 to vector<16x256xf32>
    %50 = arith.subf %49, %45 : vector<16x256xf32>
    %51 = arith.mulf %50, %26 : vector<16x256xf32>
    %52 = arith.addf %48, %51 : vector<16x256xf32>
    %c0_33 = arith.constant 0 : index
    %c0_34 = arith.constant 0 : index
    %53 = vector.load %arg6[%c0_33, %c0_34] : memref<16x256xf32, #tpu.memory_space<vmem>>, vector<16x256xf32>
    tpu.vector_store %arg6[%c0_33, %c0_34], %52 {strides = array<i32>} : memref<16x256xf32, #tpu.memory_space<vmem>>, vector<16x256xf32>,
    return
  }
  func.func @transform_0(%arg0: i32) -> (i32, i32) {
    %c0_i32 = arith.constant 0 : i32
    %c0_i32_0 = arith.constant 0 : i32
    return %arg0, %c0_i32 : i32, i32
  }
  func.func @transform_1(%arg0: i32) -> (i32, i32, i32) {
    %c0_i32 = arith.constant 0 : i32
    %c0_i32_0 = arith.constant 0 : i32
    %c0_i32_1 = arith.constant 0 : i32
    %c0_i32_2 = arith.constant 0 : i32
    return %c0_i32, %c0_i32_0, %c0_i32_1 : i32, i32, i32
  }
  func.func @transform_2(%arg0: i32) -> (i32, i32, i32) {
    %c0_i32 = arith.constant 0 : i32
    %c0_i32_0 = arith.constant 0 : i32
    %c0_i32_1 = arith.constant 0 : i32
    %c0_i32_2 = arith.constant 0 : i32
    return %c0_i32, %c0_i32_0, %c0_i32_1 : i32, i32, i32
  }
  func.func @transform_3(%arg0: i32) -> (i32, i32, i32) {
    %c0_i32 = arith.constant 0 : i32
    %c0_i32_0 = arith.constant 0 : i32
    %c0_i32_1 = arith.constant 0 : i32
    %c0_i32_2 = arith.constant 0 : i32
    return %c0_i32, %c0_i32_0, %c0_i32_1 : i32, i32, i32
  }
  func.func @transform_4(%arg0: i32) -> (i32, i32, i32) {
    %c0_i32 = arith.constant 0 : i32
    %c0_i32_0 = arith.constant 0 : i32
    %c0_i32_1 = arith.constant 0 : i32
    %c0_i32_2 = arith.constant 0 : i32
    return %c0_i32, %c0_i32_0, %c0_i32_1 : i32, i32, i32
  }
  func.func @transform_5(%arg0: i32) -> (i32, i32) {
    %c0_i32 = arith.constant 0 : i32
    %c0_i32_0 = arith.constant 0 : i32
    return %arg0, %c0_i32 : i32, i32
  }
}

</mosaic_0001>

<bundles_post_ra>
// kernel: tpu_custom_call.1
= control target key start
LH: loop header
LB: loop body
LE: loop exit
PB: predicated region body
PF: predicated region fallthrough
CT: control target
= control target key end

     0   :  { %10 = vsyncpa [#allocation3], 0  ;;  %s1357_s0 = inlined_call_operand.hbm [shape: f32[16,256], index: 0, kind: input, shape index: {}]   ;;  %s1358_s1 = inlined_call_operand.hbm [shape: f32[2,256,256], index: 1, kind: input, shape index: {}]   ;;  %s1359_s2 = inlined_call_operand.vmem [shape: f32[2,1,256], index: 2, kind: input, shape index: {}]   ;;  %s1360_s3 = inlined_call_operand.hbm [shape: f32[2,256,256], index: 3, kind: input, shape index: {}]   ;;  %s1361_s4 = inlined_call_operand.vmem [shape: f32[2,1,256], index: 4, kind: input, shape index: {}]   ;;  %s1362_s5 = inlined_call_operand.hbm [shape: f32[16,256], index: 5, kind: output, shape index: {}]  }
   0x1   :  { %11 = vsyncpa [#allocation6], 0 }
   0x2   :  { %12 = vsyncpa [#allocation4], 0  ;;  %s1190_s18 = smov [#allocation5]   ;;  %s1191_s20 = smov [#allocation2]  }
   0x3   :  { %s30_s19 = sshll.u32 %s1190_s18, 4  ;;  %s18_s21 = sshll.u32 %s1191_s20, 4  ;;  %s31_s19 = int_to_ptr.vmem [resolvable:$true] %s30_s19  ;;  %s1226_s21 = int_to_ptr.vmem [resolvable:$true] %s18_s21 }
   0x4   :  { %s1096_s24 = scalar_lea.hbm %s1358_s1, 16384 }
   0x5   :  { %p1097_p0 = scmp.ne.s32.totalorder %s1358_s1, %s1096_s24  ;;  %p1100_p1 = scmp.lt.u32.totalorder %s1096_s24, %s1358_s1 }
   0x7   :  { %p1102_p2 = pnand %p1100_p1, %p1097_p0 }
   0x9   :  { %1105 = shalt.err (!%p1102_p2)
}
   0xa   :  { %s1106_s29 = scalar_lea.vmem %s31_s19, 16384  ;;  %p1111_p4 = scmp.lt.s32.totalorder %s31_s19, %s31_s19 }
   0xb   :  { %p1107_p3 = scmp.ne.s32.totalorder %s31_s19, %s1106_s29  ;;  %p1112_p5 = scmp.lt.s32.totalorder %s1106_s29, %s1106_s29 }
   0xd   :  { %p1113_p6 = por %p1112_p5, %p1111_p4 }
   0xf   :  { %p1114_p7 = pnand %p1113_p6, %p1107_p3 }
  0x11   :  { %1117 = shalt.err (!%p1114_p7)
}
  0x12   :  { %s1192_s30 = smov 256   ;;  %s1193_s6 = smov 16  }
  0x13   :  { %36 = dma.hbm_to_vmem [thread:$0]  %s1358_s1, 16384, %s31_s19, [#allocation6], %s1192_s30, %s1192_s30, %s1193_s6  }
  0x14   :  { %s1118_s11 = scalar_lea.hbm %s1357_s0, 512 }
  0x15   :  { %p1119_p8 = scmp.ne.s32.totalorder %s1357_s0, %s1118_s11  ;;  %p1122_p9 = scmp.lt.u32.totalorder %s1118_s11, %s1357_s0 }
  0x17   :  { %p1124_p10 = pnand %p1122_p9, %p1119_p8 }
  0x19   :  { %1127 = shalt.err (!%p1124_p10)
}
  0x1a   :  { %s1128_s16 = scalar_lea.vmem %s1226_s21, 512  ;;  %p1133_p12 = scmp.lt.s32.totalorder %s1226_s21, %s1226_s21 }
  0x1b   :  { %p1129_p11 = scmp.ne.s32.totalorder %s1226_s21, %s1128_s16  ;;  %p1134_p13 = scmp.lt.s32.totalorder %s1128_s16, %s1128_s16 }
  0x1d   :  { %p1135_p0 = por %p1134_p13, %p1133_p12 }
  0x1f   :  { %p1136_p1 = pnand %p1135_p0, %p1129_p11 }
  0x21   :  { %1139 = shalt.err (!%p1136_p1)
}
  0x22   :  { %24 = dma.hbm_to_vmem [thread:$0]  %s1357_s0, 512, %s1226_s21, [#allocation3], %s1192_s30, %s1192_s30, %s1193_s6  }
  0x23   :  { %s1194_s18 = smov [#allocation7]   ;;  %s1140_s23 = scalar_lea.hbm %s1360_s3, 16384 }
  0x24   :  { %s44_s19 = sshll.u32 %s1194_s18, 4  ;;  %p1141_p2 = scmp.ne.s32.totalorder %s1360_s3, %s1140_s23  ;;  %s45_s19 = int_to_ptr.vmem [resolvable:$true] %s44_s19 }
  0x25   :  { %p1144_p3 = scmp.lt.u32.totalorder %s1140_s23, %s1360_s3 }
  0x27   :  { %p1146_p4 = pnand %p1144_p3, %p1141_p2 }
  0x29   :  { %1149 = shalt.err (!%p1146_p4)
}
  0x2a   :  { %s1150_s28 = scalar_lea.vmem %s45_s19, 16384  ;;  %p1155_p6 = scmp.lt.s32.totalorder %s45_s19, %s45_s19 }
  0x2b   :  { %p1151_p5 = scmp.ne.s32.totalorder %s45_s19, %s1150_s28  ;;  %p1156_p7 = scmp.lt.s32.totalorder %s1150_s28, %s1150_s28 }
  0x2d   :  { %p1157_p8 = por %p1156_p7, %p1155_p6 }
  0x2f   :  { %p1158_p9 = pnand %p1157_p8, %p1151_p5 }
  0x31   :  { %1161 = shalt.err (!%p1158_p9)
}
  0x32   :  { %50 = dma.hbm_to_vmem [thread:$0]  %s1360_s3, 16384, %s45_s19, [#allocation6], %s1192_s30, %s1192_s30, %s1193_s6  }
  0x33   :  { %1184 = dma.done.wait [#allocation3], 512  }
  0x34   :  { %1185 = vsyncadd [#allocation3], 4294966784 }
  0x35   :  { %1186 = dma.done.wait [#allocation6], 32768  }
  0x36   :  { %1187 = vsyncadd [#allocation6], 4294934528  ;;  %v67_v0 = vld [vmem:[#allocation7 + $0x8] sm:$0xff]  ;;  %v69_v1 = vld [vmem:[#allocation7 + $0x18] sm:$0xff] }
  0x37   :  { %v66_v2 = vld [vmem:[#allocation7] sm:$0xff]  ;;  %v802_v3 = vpack.c.bf16 %v69_v1, %v67_v0  ;;  %v68_v4 = vld [vmem:[#allocation7 + $0x10] sm:$0xff]  ;;  %v71_v5 = vld [vmem:[#allocation7 + $0x28] sm:$0xff] }
  0x38   :  { %v73_v6 = vld [vmem:[#allocation7 + $0x38] sm:$0xff]  ;;  %v804_v7 = vpack.c.bf16 %v68_v4, %v66_v2  ;;  %v70_v9 = vld [vmem:[#allocation7 + $0x20] sm:$0xff]  ;;  %v72_v10 = vld [vmem:[#allocation7 + $0x30] sm:$0xff] }
  0x39   :  { %v806_v8 = vpack.c.bf16 %v73_v6, %v71_v5  ;;  %v75_v11 = vld [vmem:[#allocation7 + $0x48] sm:$0xff]  ;;  %803 = vmatprep.subr.bf16.mxu0 %v802_v3  ;;  %v77_v12 = vld [vmem:[#allocation7 + $0x58] sm:$0xff]  ;;  %v808_v13 = vpack.c.bf16 %v72_v10, %v70_v9  ;;  %v74_v15 = vld [vmem:[#allocation7 + $0x40] sm:$0xff] }
  0x3a   :  { %805 = vmatpush1.bf16.msra.mxu0 %v804_v7  ;;  %v810_v14 = vpack.c.bf16 %v77_v12, %v75_v11  ;;  %v76_v16 = vld [vmem:[#allocation7 + $0x50] sm:$0xff]  ;;  %v79_v17 = vld [vmem:[#allocation7 + $0x68] sm:$0xff]  ;;  %v81_v18 = vld [vmem:[#allocation7 + $0x78] sm:$0xff] }
  0x3b   :  { %807 = vmatprep.subr.bf16.mxu0 %v806_v8  ;;  %v812_v19 = vpack.c.bf16 %v76_v16, %v74_v15  ;;  %v78_v20 = vld [vmem:[#allocation7 + $0x60] sm:$0xff]  ;;  %v220_v21 = vld [vmem:[#allocation5 + $0x8] sm:$0xff]  ;;  %v814_v22 = vpack.c.bf16 %v81_v18, %v79_v17  ;;  %v80_v23 = vld [vmem:[#allocation7 + $0x70] sm:$0xff] }
  0x3c   :  { %v83_v24 = vld [vmem:[#allocation7 + $0x88] sm:$0xff]  ;;  %v222_v25 = vld [vmem:[#allocation5 + $0x18] sm:$0xff]  ;;  %v219_v28 = vld [vmem:[#allocation5] sm:$0xff]  ;;  %v816_v33 = vpack.c.bf16 %v80_v23, %v78_v20 }
  0x3d   :  { %v85_v26 = vld [vmem:[#allocation7 + $0x98] sm:$0xff]  ;;  %v866_v27 = vpack.c.bf16 %v222_v25, %v220_v21  ;;  %v221_v29 = vld [vmem:[#allocation5 + $0x10] sm:$0xff]  ;;  %v224_v31 = vld [vmem:[#allocation5 + $0x28] sm:$0xff] }
  0x3e   :  { %809 = vmatpush1.bf16.msra.mxu0 %v808_v13  ;;  %v868_v30 = vpack.c.bf16 %v221_v29, %v219_v28  ;;  %v226_v32 = vld [vmem:[#allocation5 + $0x38] sm:$0xff]  ;;  %v82_v34 = vld [vmem:[#allocation7 + $0x80] sm:$0xff]  ;;  %v818_v37 = vpack.c.bf16 %v85_v26, %v83_v24  ;;  %v84_v38 = vld [vmem:[#allocation7 + $0x90] sm:$0xff] }
  0x3f   :  { %811 = vmatprep.subr.bf16.mxu0 %v810_v14  ;;  %867 = vmatprep.subr.bf16.mxu1 %v866_v27  ;;  %v870_v35 = vpack.c.bf16 %v226_v32, %v224_v31  ;;  %v223_v36 = vld [vmem:[#allocation5 + $0x20] sm:$0xff]  ;;  %v87_v39 = vld [vmem:[#allocation7 + $0xa8] sm:$0xff]  ;;  %v225_v40 = vld [vmem:[#allocation5 + $0x30] sm:$0xff]  ;;  %v820_v48 = vpack.c.bf16 %v84_v38, %v82_v34 }
  0x40   :  { %869 = vmatpush1.bf16.msra.mxu1 %v868_v30  ;;  %v89_v41 = vld [vmem:[#allocation7 + $0xb8] sm:$0xff]  ;;  %v872_v42 = vpack.c.bf16 %v225_v40, %v223_v36  ;;  %v228_v43 = vld [vmem:[#allocation5 + $0x48] sm:$0xff]  ;;  %v227_v46 = vld [vmem:[#allocation5 + $0x40] sm:$0xff] }
  0x41   :  { %871 = vmatprep.subr.bf16.mxu1 %v870_v35  ;;  %v230_v44 = vld [vmem:[#allocation5 + $0x58] sm:$0xff]  ;;  %v229_v47 = vld [vmem:[#allocation5 + $0x50] sm:$0xff]  ;;  %v86_v49 = vld [vmem:[#allocation7 + $0xa0] sm:$0xff]  ;;  %v822_v51 = vpack.c.bf16 %v89_v41, %v87_v39 }
  0x42   :  { %813 = vmatpush1.bf16.msra.mxu0 %v812_v19  ;;  %v874_v45 = vpack.c.bf16 %v230_v44, %v228_v43  ;;  %v232_v50 = vld [vmem:[#allocation5 + $0x68] sm:$0xff]  ;;  %v88_v52 = vld [vmem:[#allocation7 + $0xb0] sm:$0xff]  ;;  %v876_v54 = vpack.c.bf16 %v229_v47, %v227_v46  ;;  %v234_v55 = vld [vmem:[#allocation5 + $0x78] sm:$0xff] }
  0x43   :  { %815 = vmatprep.subr.bf16.mxu0 %v814_v22  ;;  %v91_v53 = vld [vmem:[#allocation7 + $0xc8] sm:$0xff]  ;;  %v93_v56 = vld [vmem:[#allocation7 + $0xd8] sm:$0xff]  ;;  %v878_v57 = vpack.c.bf16 %v234_v55, %v232_v50  ;;  %v231_v58 = vld [vmem:[#allocation5 + $0x60] sm:$0xff]  ;;  %v824_v62 = vpack.c.bf16 %v88_v52, %v86_v49 }
  0x44   :  { %873 = vmatpush1.bf16.msra.mxu1 %v872_v42  ;;  %v233_v59 = vld [vmem:[#allocation5 + $0x70] sm:$0xff]  ;;  %v236_v60 = vld [vmem:[#allocation5 + $0x88] sm:$0xff]  ;;  %v238_v61 = vld [vmem:[#allocation5 + $0x98] sm:$0xff]  ;;  %v826_v63 = vpack.c.bf16 %v93_v56, %v91_v53 }
  0x45   :  { %875 = vmatprep.subr.bf16.mxu1 %v874_v45  ;;  %v90_v0 = vld [vmem:[#allocation7 + $0xc0] sm:$0xff]  ;;  %v92_v1 = vld [vmem:[#allocation7 + $0xd0] sm:$0xff]  ;;  %v95_v2 = vld [vmem:[#allocation7 + $0xe8] sm:$0xff]  ;;  %v880_v3 = vpack.c.bf16 %v233_v59, %v231_v58  ;;  %v882_v5 = vpack.c.bf16 %v238_v61, %v236_v60 }
  0x46   :  { %817 = vmatpush1.bf16.msra.mxu0 %v816_v33  ;;  %v97_v4 = vld [vmem:[#allocation7 + $0xf8] sm:$0xff]  ;;  %v235_v6 = vld [vmem:[#allocation5 + $0x80] sm:$0xff]  ;;  %v237_v7 = vld [vmem:[#allocation5 + $0x90] sm:$0xff]  ;;  %v828_v10 = vpack.c.bf16 %v92_v1, %v90_v0 }
  0x47   :  { %819 = vmatprep.subr.bf16.mxu0 %v818_v37  ;;  %v240_v8 = vld [vmem:[#allocation5 + $0xa8] sm:$0xff]  ;;  %v242_v9 = vld [vmem:[#allocation5 + $0xb8] sm:$0xff]  ;;  %v830_v11 = vpack.c.bf16 %v97_v4, %v95_v2  ;;  %v94_v12 = vld [vmem:[#allocation7 + $0xe0] sm:$0xff]  ;;  %v884_v15 = vpack.c.bf16 %v237_v7, %v235_v6 }
  0x48   :  { %877 = vmatpush1.bf16.msra.mxu1 %v876_v54  ;;  %v96_v13 = vld [vmem:[#allocation7 + $0xf0] sm:$0xff]  ;;  %v99_v14 = vld [vmem:[#allocation7 + $0x108] sm:$0xff]  ;;  %v101_v16 = vld [vmem:[#allocation7 + $0x118] sm:$0xff]  ;;  %v886_v17 = vpack.c.bf16 %v242_v9, %v240_v8 }
  0x49   :  { %879 = vmatprep.subr.bf16.mxu1 %v878_v57  ;;  %v239_v18 = vld [vmem:[#allocation5 + $0xa0] sm:$0xff]  ;;  %v241_v19 = vld [vmem:[#allocation5 + $0xb0] sm:$0xff]  ;;  %v244_v20 = vld [vmem:[#allocation5 + $0xc8] sm:$0xff]  ;;  %v832_v22 = vpack.c.bf16 %v96_v13, %v94_v12  ;;  %v834_v23 = vpack.c.bf16 %v101_v16, %v99_v14 }
  0x4a   :  { %821 = vmatpush1.bf16.msra.mxu0 %v820_v48  ;;  %v246_v21 = vld [vmem:[#allocation5 + $0xd8] sm:$0xff]  ;;  %v98_v24 = vld [vmem:[#allocation7 + $0x100] sm:$0xff]  ;;  %v100_v25 = vld [vmem:[#allocation7 + $0x110] sm:$0xff]  ;;  %v888_v27 = vpack.c.bf16 %v241_v19, %v239_v18 }
  0x4b   :  { %823 = vmatprep.subr.bf16.mxu0 %v822_v51  ;;  %v103_v26 = vld [vmem:[#allocation7 + $0x128] sm:$0xff]  ;;  %v105_v28 = vld [vmem:[#allocation7 + $0x138] sm:$0xff]  ;;  %v890_v29 = vpack.c.bf16 %v246_v21, %v244_v20  ;;  %v243_v30 = vld [vmem:[#allocation5 + $0xc0] sm:$0xff]  ;;  %v836_v34 = vpack.c.bf16 %v100_v25, %v98_v24 }
  0x4c   :  { %881 = vmatpush1.bf16.msra.mxu1 %v880_v3  ;;  %v245_v31 = vld [vmem:[#allocation5 + $0xd0] sm:$0xff]  ;;  %v248_v32 = vld [vmem:[#allocation5 + $0xe8] sm:$0xff]  ;;  %v250_v33 = vld [vmem:[#allocation5 + $0xf8] sm:$0xff]  ;;  %v838_v36 = vpack.c.bf16 %v105_v28, %v103_v26 }
  0x4d   :  { %883 = vmatprep.subr.bf16.mxu1 %v882_v5  ;;  %v102_v35 = vld [vmem:[#allocation7 + $0x120] sm:$0xff]  ;;  %v104_v37 = vld [vmem:[#allocation7 + $0x130] sm:$0xff]  ;;  %v107_v38 = vld [vmem:[#allocation7 + $0x148] sm:$0xff]  ;;  %v892_v40 = vpack.c.bf16 %v245_v31, %v243_v30  ;;  %v894_v41 = vpack.c.bf16 %v250_v33, %v248_v32 }
  0x4e   :  { %825 = vmatpush1.bf16.msra.mxu0 %v824_v62  ;;  %v109_v39 = vld [vmem:[#allocation7 + $0x158] sm:$0xff]  ;;  %v247_v42 = vld [vmem:[#allocation5 + $0xe0] sm:$0xff]  ;;  %v249_v43 = vld [vmem:[#allocation5 + $0xf0] sm:$0xff]  ;;  %v840_v47 = vpack.c.bf16 %v104_v37, %v102_v35 }
  0x4f   :  { %827 = vmatprep.subr.bf16.mxu0 %v826_v63  ;;  %v1278_v44 = vld [vmem:[#allocation2 + $0x8] sm:$0xff]  ;;  %v254_v46 = vld [vmem:[#allocation5 + $0x118] sm:$0xff]  ;;  %v842_v48 = vpack.c.bf16 %v109_v39, %v107_v38  ;;  %v106_v49 = vld [vmem:[#allocation7 + $0x140] sm:$0xff]  ;;  %v896_v52 = vpack.c.bf16 %v249_v43, %v247_v42 }
  0x50   :  { %885 = vmatpush1.bf16.msra.mxu1 %v884_v15  ;;  %v252_v45 = vld [vmem:[#allocation5 + $0x108] sm:$0xff]  ;;  %206 = vmatprep.mubr.f32.mxu0 %v1278_v44  ;;  %v108_v50 = vld [vmem:[#allocation7 + $0x150] sm:$0xff]  ;;  %v113_v53 = vld [vmem:[#allocation7 + $0x178] sm:$0xff] }
  0x51   :  { %887 = vmatprep.subr.bf16.mxu1 %v886_v17  ;;  %359 = vmatprep.mubr.f32.mxu1 %v1278_v44  ;;  %v111_v51 = vld [vmem:[#allocation7 + $0x168] sm:$0xff]  ;;  %v898_v54 = vpack.c.bf16 %v254_v46, %v252_v45  ;;  %v251_v55 = vld [vmem:[#allocation5 + $0x100] sm:$0xff]  ;;  %v253_v56 = vld [vmem:[#allocation5 + $0x110] sm:$0xff]  ;;  %v844_v59 = vpack.c.bf16 %v108_v50, %v106_v49 }
  0x52   :  { %829 = vmatpush1.bf16.msra.mxu0 %v828_v10  ;;  %v256_v57 = vld [vmem:[#allocation5 + $0x128] sm:$0xff]  ;;  %v258_v58 = vld [vmem:[#allocation5 + $0x138] sm:$0xff]  ;;  %v846_v60 = vpack.c.bf16 %v113_v53, %v111_v51  ;;  %v110_v61 = vld [vmem:[#allocation7 + $0x160] sm:$0xff]  ;;  %v900_v0 = vpack.c.bf16 %v253_v56, %v251_v55 }
  0x53   :  { %831 = vmatprep.subr.bf16.mxu0 %v830_v11  ;;  %v112_v62 = vld [vmem:[#allocation7 + $0x170] sm:$0xff]  ;;  %v115_v63 = vld [vmem:[#allocation7 + $0x188] sm:$0xff]  ;;  %v117_v1 = vld [vmem:[#allocation7 + $0x198] sm:$0xff]  ;;  %v902_v2 = vpack.c.bf16 %v258_v58, %v256_v57 }
  0x54   :  { %889 = vmatpush1.bf16.msra.mxu1 %v888_v27  ;;  %v255_v3 = vld [vmem:[#allocation5 + $0x120] sm:$0xff]  ;;  %v257_v4 = vld [vmem:[#allocation5 + $0x130] sm:$0xff]  ;;  %v260_v5 = vld [vmem:[#allocation5 + $0x148] sm:$0xff]  ;;  %v848_v7 = vpack.c.bf16 %v112_v62, %v110_v61  ;;  %v850_v8 = vpack.c.bf16 %v117_v1, %v115_v63 }
  0x55   :  { %891 = vmatprep.subr.bf16.mxu1 %v890_v29  ;;  %v262_v6 = vld [vmem:[#allocation5 + $0x158] sm:$0xff]  ;;  %v114_v9 = vld [vmem:[#allocation7 + $0x180] sm:$0xff]  ;;  %v116_v10 = vld [vmem:[#allocation7 + $0x190] sm:$0xff]  ;;  %v904_v12 = vpack.c.bf16 %v257_v4, %v255_v3 }
  0x56   :  { %833 = vmatpush1.bf16.msra.mxu0 %v832_v22  ;;  %v119_v11 = vld [vmem:[#allocation7 + $0x1a8] sm:$0xff]  ;;  %v121_v13 = vld [vmem:[#allocation7 + $0x1b8] sm:$0xff]  ;;  %v906_v14 = vpack.c.bf16 %v262_v6, %v260_v5  ;;  %v259_v15 = vld [vmem:[#allocation5 + $0x140] sm:$0xff]  ;;  %v852_v19 = vpack.c.bf16 %v116_v10, %v114_v9 }
  0x57   :  { %835 = vmatprep.subr.bf16.mxu0 %v834_v23  ;;  %v261_v16 = vld [vmem:[#allocation5 + $0x150] sm:$0xff]  ;;  %v264_v17 = vld [vmem:[#allocation5 + $0x168] sm:$0xff]  ;;  %v266_v18 = vld [vmem:[#allocation5 + $0x178] sm:$0xff]  ;;  %v854_v20 = vpack.c.bf16 %v121_v13, %v119_v11 }
  0x58   :  { %893 = vmatpush1.bf16.msra.mxu1 %v892_v40  ;;  %v118_v21 = vld [vmem:[#allocation7 + $0x1a0] sm:$0xff]  ;;  %v120_v22 = vld [vmem:[#allocation7 + $0x1b0] sm:$0xff]  ;;  %v123_v23 = vld [vmem:[#allocation7 + $0x1c8] sm:$0xff]  ;;  %v908_v24 = vpack.c.bf16 %v261_v16, %v259_v15  ;;  %v910_v26 = vpack.c.bf16 %v266_v18, %v264_v17 }
  0x59   :  { %895 = vmatprep.subr.bf16.mxu1 %v894_v41  ;;  %v125_v25 = vld [vmem:[#allocation7 + $0x1d8] sm:$0xff]  ;;  %v263_v27 = vld [vmem:[#allocation5 + $0x160] sm:$0xff]  ;;  %v265_v28 = vld [vmem:[#allocation5 + $0x170] sm:$0xff]  ;;  %v856_v31 = vpack.c.bf16 %v120_v22, %v118_v21 }
  0x5a   :  { %837 = vmatpush1.bf16.msra.mxu0 %v836_v34  ;;  %v268_v29 = vld [vmem:[#allocation5 + $0x188] sm:$0xff]  ;;  %v270_v30 = vld [vmem:[#allocation5 + $0x198] sm:$0xff]  ;;  %v858_v32 = vpack.c.bf16 %v125_v25, %v123_v23  ;;  %v122_v33 = vld [vmem:[#allocation7 + $0x1c0] sm:$0xff] }
  0x5b   :  { %839 = vmatprep.subr.bf16.mxu0 %v838_v36  ;;  %v124_v34 = vld [vmem:[#allocation7 + $0x1d0] sm:$0xff]  ;;  %v127_v35 = vld [vmem:[#allocation7 + $0x1e8] sm:$0xff]  ;;  %v912_v36 = vpack.c.bf16 %v265_v28, %v263_v27  ;;  %v129_v37 = vld [vmem:[#allocation7 + $0x1f8] sm:$0xff]  ;;  %v914_v38 = vpack.c.bf16 %v270_v30, %v268_v29 }
  0x5c   :  { %897 = vmatpush1.bf16.msra.mxu1 %v896_v52  ;;  %v267_v39 = vld [vmem:[#allocation5 + $0x180] sm:$0xff]  ;;  %v269_v40 = vld [vmem:[#allocation5 + $0x190] sm:$0xff]  ;;  %v272_v41 = vld [vmem:[#allocation5 + $0x1a8] sm:$0xff]  ;;  %v860_v43 = vpack.c.bf16 %v124_v34, %v122_v33  ;;  %v862_v45 = vpack.c.bf16 %v129_v37, %v127_v35 }
  0x5d   :  { %899 = vmatprep.subr.bf16.mxu1 %v898_v54  ;;  %v274_v42 = vld [vmem:[#allocation5 + $0x1b8] sm:$0xff]  ;;  %v126_v46 = vld [vmem:[#allocation7 + $0x1e0] sm:$0xff]  ;;  %v273_v51 = vld [vmem:[#allocation5 + $0x1b0] sm:$0xff] }
  0x5e   :  { %841 = vmatpush1.bf16.msra.mxu0 %v840_v47  ;;  %v128_v47 = vld [vmem:[#allocation7 + $0x1f0] sm:$0xff]  ;;  %v271_v49 = vld [vmem:[#allocation5 + $0x1a0] sm:$0xff]  ;;  %v918_v50 = vpack.c.bf16 %v274_v42, %v272_v41  ;;  %v418_v52 = vld [vmem:[#allocation7 + $0x208] sm:$0xff] }
  0x5f   :  { %843 = vmatprep.subr.bf16.mxu0 %v842_v48  ;;  %v916_v48 = vpack.c.bf16 %v269_v40, %v267_v39  ;;  %v420_v53 = vld [vmem:[#allocation7 + $0x218] sm:$0xff]  ;;  %v276_v54 = vld [vmem:[#allocation5 + $0x1c8] sm:$0xff]  ;;  %v864_v56 = vpack.c.bf16 %v128_v47, %v126_v46  ;;  %v920_v57 = vpack.c.bf16 %v273_v51, %v271_v49  ;;  %v275_v58 = vld [vmem:[#allocation5 + $0x1c0] sm:$0xff] }
  0x60   :  { %901 = vmatpush1.bf16.msra.mxu1 %v900_v0  ;;  %v278_v55 = vld [vmem:[#allocation5 + $0x1d8] sm:$0xff]  ;;  %v419_v61 = vld [vmem:[#allocation7 + $0x210] sm:$0xff]  ;;  %v422_v0 = vld [vmem:[#allocation7 + $0x228] sm:$0xff] }
  0x61   :  { %903 = vmatprep.subr.bf16.mxu1 %v902_v2  ;;  %v922_v62 = vpack.c.bf16 %v278_v55, %v276_v54  ;;  %v277_v63 = vld [vmem:[#allocation5 + $0x1d0] sm:$0xff]  ;;  %v424_v1 = vld [vmem:[#allocation7 + $0x238] sm:$0xff]  ;;  %v280_v2 = vld [vmem:[#allocation5 + $0x1e8] sm:$0xff] }
  0x62   :  { %845 = vmatpush1.bf16.msra.mxu0 %v844_v59  ;;  %v930_v59 = vpack.c.bf16 %v420_v53, %v418_v52  ;;  %v282_v3 = vld [vmem:[#allocation5 + $0x1f8] sm:$0xff]  ;;  %v1282_v4 = vld [vmem:[#allocation2] sm:$0xff]  ;;  %v934_v9 = vpack.c.bf16 %v424_v1, %v422_v0  ;;  %v423_v11 = vld [vmem:[#allocation7 + $0x230] sm:$0xff] }
  0x63   :  { %847 = vmatprep.subr.bf16.mxu0 %v846_v60  ;;  %v417_v60 = vld [vmem:[#allocation7 + $0x200] sm:$0xff]  ;;  %v1284_v5 = vld [vmem:[#allocation2 + $0x18] sm:$0xff]  ;;  %v281_v13 = vld [vmem:[#allocation5 + $0x1f0] sm:$0xff] }
  0x64   :  { %905 = vmatpush1.bf16.msra.mxu1 %v904_v12  ;;  %v932_v6 = vpack.c.bf16 %v419_v61, %v417_v60  ;;  %v421_v10 = vld [vmem:[#allocation7 + $0x220] sm:$0xff]  ;;  %v926_v12 = vpack.c.bf16 %v282_v3, %v280_v2  ;;  %v428_v15 = vld [vmem:[#allocation7 + $0x258] sm:$0xff]  ;;  %v573_v16 = vld [vmem:[#allocation5 + $0x208] sm:$0xff] }
  0x65   :  { %907 = vmatprep.subr.bf16.mxu1 %v906_v14  ;;  %v426_v14 = vld [vmem:[#allocation7 + $0x248] sm:$0xff]  ;;  %v575_v17 = vld [vmem:[#allocation5 + $0x218] sm:$0xff]  ;;  %v1288_v18 = vld [vmem:[#allocation2 + $0x10] sm:$0xff] }
  0x66   :  { %849 = vmatpush1.bf16.msra.mxu0 %v848_v7  ;;  %v924_v7 = vpack.c.bf16 %v277_v63, %v275_v58  ;;  %v938_v21 = vpack.c.bf16 %v428_v15, %v426_v14  ;;  %v425_v22 = vld [vmem:[#allocation7 + $0x240] sm:$0xff]  ;;  %v427_v23 = vld [vmem:[#allocation7 + $0x250] sm:$0xff]  ;;  %v577_v27 = vld [vmem:[#allocation5 + $0x228] sm:$0xff] }
  0x67   :  { %851 = vmatprep.subr.bf16.mxu0 %v850_v8  ;;  %v279_v8 = vld [vmem:[#allocation5 + $0x1e0] sm:$0xff]  ;;  %v579_v28 = vld [vmem:[#allocation5 + $0x238] sm:$0xff]  ;;  %v430_v29 = vld [vmem:[#allocation7 + $0x268] sm:$0xff] }
  0x68   :  { %909 = vmatpush1.bf16.msra.mxu1 %v908_v24  ;;  %v994_v24 = vpack.c.bf16 %v575_v17, %v573_v16  ;;  %v572_v25 = vld [vmem:[#allocation5 + $0x200] sm:$0xff]  ;;  %v432_v30 = vld [vmem:[#allocation7 + $0x278] sm:$0xff]  ;;  %v431_v35 = vld [vmem:[#allocation7 + $0x270] sm:$0xff] }
  0x69   :  { %911 = vmatprep.subr.bf16.mxu1 %v910_v26  ;;  %v574_v26 = vld [vmem:[#allocation5 + $0x210] sm:$0xff]  ;;  %v576_v33 = vld [vmem:[#allocation5 + $0x220] sm:$0xff]  ;;  %v434_v39 = vld [vmem:[#allocation7 + $0x288] sm:$0xff] }
  0x6a   :  { %853 = vmatpush1.bf16.msra.mxu0 %v852_v19  ;;  %v936_v19 = vpack.c.bf16 %v423_v11, %v421_v10  ;;  %v429_v34 = vld [vmem:[#allocation7 + $0x260] sm:$0xff]  ;;  %v578_v37 = vld [vmem:[#allocation5 + $0x230] sm:$0xff]  ;;  %v436_v40 = vld [vmem:[#allocation7 + $0x298] sm:$0xff] }
  0x6b   :  { %855 = vmatprep.subr.bf16.mxu0 %v854_v20  ;;  %v928_v20 = vpack.c.bf16 %v281_v13, %v279_v8  ;;  %v581_v41 = vld [vmem:[#allocation5 + $0x248] sm:$0xff]  ;;  %v583_v42 = vld [vmem:[#allocation5 + $0x258] sm:$0xff]  ;;  %v580_v46 = vld [vmem:[#allocation5 + $0x240] sm:$0xff]  ;;  %v946_v47 = vpack.c.bf16 %v436_v40, %v434_v39 }
  0x6c   :  { %913 = vmatpush1.bf16.msra.mxu1 %v912_v36  ;;  %v998_v36 = vpack.c.bf16 %v579_v28, %v577_v27  ;;  %v435_v49 = vld [vmem:[#allocation7 + $0x290] sm:$0xff]  ;;  %v438_v52 = vld [vmem:[#allocation7 + $0x2a8] sm:$0xff]  ;;  %v440_v53 = vld [vmem:[#allocation7 + $0x2b8] sm:$0xff] }
  0x6d   :  { %915 = vmatprep.subr.bf16.mxu1 %v914_v38  ;;  %v942_v38 = vpack.c.bf16 %v432_v30, %v430_v29  ;;  %v582_v51 = vld [vmem:[#allocation5 + $0x250] sm:$0xff]  ;;  %v585_v54 = vld [vmem:[#allocation5 + $0x268] sm:$0xff]  ;;  %v587_v55 = vld [vmem:[#allocation5 + $0x278] sm:$0xff] }
  0x6e   :  { %857 = vmatpush1.bf16.msra.mxu0 %v856_v31  ;;  %v940_v31 = vpack.c.bf16 %v427_v23, %v425_v22  ;;  %v584_v58 = vld [vmem:[#allocation5 + $0x260] sm:$0xff]  ;;  %v439_v61 = vld [vmem:[#allocation7 + $0x2b0] sm:$0xff]  ;;  %v442_v0 = vld [vmem:[#allocation7 + $0x2c8] sm:$0xff] }
  0x6f   :  { %859 = vmatprep.subr.bf16.mxu0 %v858_v32  ;;  %v996_v32 = vpack.c.bf16 %v574_v26, %v572_v25  ;;  %v437_v60 = vld [vmem:[#allocation7 + $0x2a0] sm:$0xff]  ;;  %v586_v63 = vld [vmem:[#allocation5 + $0x270] sm:$0xff]  ;;  %v444_v1 = vld [vmem:[#allocation7 + $0x2d8] sm:$0xff] }
  0x70   :  { %917 = vmatpush1.bf16.msra.mxu1 %v916_v48  ;;  %v433_v48 = vld [vmem:[#allocation7 + $0x280] sm:$0xff]  ;;  %v589_v2 = vld [vmem:[#allocation5 + $0x288] sm:$0xff]  ;;  %v591_v3 = vld [vmem:[#allocation5 + $0x298] sm:$0xff]  ;;  %v954_v8 = vpack.c.bf16 %v444_v1, %v442_v0 }
  0x71   :  { %919 = vmatprep.subr.bf16.mxu1 %v918_v50  ;;  %v1002_v50 = vpack.c.bf16 %v583_v42, %v581_v41  ;;  %v443_v10 = vld [vmem:[#allocation7 + $0x2d0] sm:$0xff]  ;;  %v1010_v11 = vpack.c.bf16 %v591_v3, %v589_v2  ;;  %v593_v14 = vld [vmem:[#allocation5 + $0x2a8] sm:$0xff]  ;;  %v595_v15 = vld [vmem:[#allocation5 + $0x2b8] sm:$0xff] }
  0x72   :  { %861 = vmatpush1.bf16.msra.mxu0 %v860_v43  ;;  %v944_v43 = vpack.c.bf16 %v431_v35, %v429_v34  ;;  %v590_v13 = vld [vmem:[#allocation5 + $0x290] sm:$0xff]  ;;  %v597_v22 = vld [vmem:[#allocation5 + $0x2c8] sm:$0xff]  ;;  %v599_v23 = vld [vmem:[#allocation5 + $0x2d8] sm:$0xff] }
  0x73   :  { %863 = vmatprep.subr.bf16.mxu0 %v862_v45  ;;  %v1000_v45 = vpack.c.bf16 %v578_v37, %v576_v33  ;;  %v1018_v25 = vpack.c.bf16 %v599_v23, %v597_v22  ;;  %v596_v26 = vld [vmem:[#allocation5 + $0x2c0] sm:$0xff]  ;;  %v598_v27 = vld [vmem:[#allocation5 + $0x2d0] sm:$0xff]  ;;  %v446_v29 = vld [vmem:[#allocation7 + $0x2e8] sm:$0xff] }
  0x74   :  { %921 = vmatpush1.bf16.msra.mxu1 %v920_v57  ;;  %v1004_v57 = vpack.c.bf16 %v582_v51, %v580_v46  ;;  %v1020_v28 = vpack.c.bf16 %v598_v27, %v596_v26  ;;  %v448_v30 = vld [vmem:[#allocation7 + $0x2f8] sm:$0xff]  ;;  %v445_v34 = vld [vmem:[#allocation7 + $0x2e0] sm:$0xff]  ;;  %v447_v35 = vld [vmem:[#allocation7 + $0x2f0] sm:$0xff] }
  0x75   :  { %923 = vmatprep.subr.bf16.mxu1 %v922_v62  ;;  %v1006_v62 = vpack.c.bf16 %v587_v55, %v585_v54  ;;  %v603_v33 = vld [vmem:[#allocation5 + $0x2f8] sm:$0xff]  ;;  %v960_v37 = vpack.c.bf16 %v447_v35, %v445_v34  ;;  %v602_v39 = vld [vmem:[#allocation5 + $0x2f0] sm:$0xff]  ;;  %v450_v41 = vld [vmem:[#allocation7 + $0x308] sm:$0xff] }
  0x76   :  { %865 = vmatpush1.bf16.msra.mxu0 %v864_v56  ;;  %v948_v56 = vpack.c.bf16 %v435_v49, %v433_v48  ;;  %v452_v42 = vld [vmem:[#allocation7 + $0x318] sm:$0xff]  ;;  %v451_v48 = vld [vmem:[#allocation7 + $0x310] sm:$0xff]  ;;  %v604_v51 = vld [vmem:[#allocation5 + $0x300] sm:$0xff] }
  0x77   :  { %931 = vmatprep.subr.bf16.mxu0 %v930_v59  ;;  %v950_v59 = vpack.c.bf16 %v440_v53, %v438_v52  ;;  %v607_v46 = vld [vmem:[#allocation5 + $0x318] sm:$0xff]  ;;  %v606_v52 = vld [vmem:[#allocation5 + $0x310] sm:$0xff]  ;;  %v454_v54 = vld [vmem:[#allocation7 + $0x328] sm:$0xff] }
  0x78   :  { %925 = vmatpush1.bf16.msra.mxu1 %v924_v7  ;;  %v1008_v7 = vpack.c.bf16 %v586_v63, %v584_v58  ;;  %v1028_v53 = vpack.c.bf16 %v606_v52, %v604_v51  ;;  %v456_v55 = vld [vmem:[#allocation7 + $0x338] sm:$0xff]  ;;  %v608_v63 = vld [vmem:[#allocation5 + $0x320] sm:$0xff]  ;;  %v610_v0 = vld [vmem:[#allocation5 + $0x330] sm:$0xff] }
  0x79   :  { %207 = vmatmul.mubr.f32.vlgmr.msra.gmra.mrb[0].mxu0 %v1282_v4  ;;  %927 = vmatprep.subr.bf16.mxu1 %v926_v12  ;;  %v588_v12 = vld [vmem:[#allocation5 + $0x280] sm:$0xff]  ;;  %v611_v58 = vld [vmem:[#allocation5 + $0x338] sm:$0xff]  ;;  %v1032_v1 = vpack.c.bf16 %v610_v0, %v608_v63  ;;  %v458_v2 = vld [vmem:[#allocation7 + $0x348] sm:$0xff] }
  0x7a   :  { %212 = vmatprep.mubr.f32.mxu0 %v1284_v5  ;;  %933 = vmatpush1.bf16.msra.mxu0 %v932_v6  ;;  %v952_v6 = vpack.c.bf16 %v439_v61, %v437_v60  ;;  %v1012_v17 = vpack.c.bf16 %v590_v13, %v588_v12  ;;  %v455_v60 = vld [vmem:[#allocation7 + $0x330] sm:$0xff]  ;;  %v460_v3 = vld [vmem:[#allocation7 + $0x358] sm:$0xff]  ;;  %v612_v13 = vld [vmem:[#allocation5 + $0x340] sm:$0xff] }
  0x7b   :  { %935 = vmatprep.subr.bf16.mxu0 %v934_v9  ;;  %v441_v9 = vld [vmem:[#allocation7 + $0x2c0] sm:$0xff]  ;;  %v463_v23 = vld [vmem:[#allocation7 + $0x370] sm:$0xff] }
  0x7c   :  { %929 = vmatpush1.bf16.msra.mxu1 %v928_v20  ;;  %v956_v16 = vpack.c.bf16 %v443_v10, %v441_v9  ;;  %v592_v20 = vld [vmem:[#allocation5 + $0x2a0] sm:$0xff]  ;;  %v459_v10 = vld [vmem:[#allocation7 + $0x350] sm:$0xff] }
  0x7d   :  { %213 = vmatmul.mubr.f32.gmra.mrb[2].mxu0 %v1288_v18  ;;  %995 = vmatprep.subr.bf16.mxu1 %v994_v24  ;;  %v457_v9 = vld [vmem:[#allocation7 + $0x340] sm:$0xff]  ;;  %v618_v27 = vld [vmem:[#allocation5 + $0x370] sm:$0xff] }
  0x7e   :  { %937 = vmatpush1.bf16.msra.mxu0 %v936_v19  ;;  %v1014_v19 = vpack.c.bf16 %v595_v15, %v593_v14  ;;  %v972_v12 = vpack.c.bf16 %v459_v10, %v457_v9  ;;  %v614_v14 = vld [vmem:[#allocation5 + $0x350] sm:$0xff]  ;;  %v461_v22 = vld [vmem:[#allocation7 + $0x360] sm:$0xff] }
  0x7f   :  { %939 = vmatprep.subr.bf16.mxu0 %v938_v21  ;;  %360 = vmatmul.mubr.f32.vlgmr.msra.gmra.mrb[0].mxu1 %v1282_v4  ;;  %v594_v21 = vld [vmem:[#allocation5 + $0x2b0] sm:$0xff]  ;;  %v1036_v15 = vpack.c.bf16 %v614_v14, %v612_v13  ;;  %v616_v26 = vld [vmem:[#allocation5 + $0x360] sm:$0xff] }
  0x80   :  { %365 = vmatprep.mubr.f32.mxu1 %v1284_v5  ;;  %997 = vmatpush1.bf16.msra.mxu1 %v996_v32  ;;  %v1016_v24 = vpack.c.bf16 %v594_v21, %v592_v20  ;;  %v958_v32 = vpack.c.bf16 %v448_v30, %v446_v29  ;;  %v619_v21 = vld [vmem:[#allocation5 + $0x378] sm:$0xff]  ;;  %v466_v29 = vld [vmem:[#allocation7 + $0x388] sm:$0xff]  ;;  %v465_v34 = vld [vmem:[#allocation7 + $0x380] sm:$0xff] }
  0x81   :  { %999 = vmatprep.subr.bf16.mxu1 %v998_v36  ;;  %v468_v30 = vld [vmem:[#allocation7 + $0x398] sm:$0xff]  ;;  %v467_v35 = vld [vmem:[#allocation7 + $0x390] sm:$0xff]  ;;  %v628_v63 = vld [vmem:[#allocation5 + $0x3c0] sm:$0xff] }
  0x82   :  { %941 = vmatpush1.bf16.msra.mxu0 %v940_v31  ;;  %v601_v31 = vld [vmem:[#allocation5 + $0x2e8] sm:$0xff]  ;;  %v626_v51 = vld [vmem:[#allocation5 + $0x3b0] sm:$0xff]  ;;  %v477_v9 = vld [vmem:[#allocation7 + $0x3e0] sm:$0xff] }
  0x83   :  { %943 = vmatprep.subr.bf16.mxu0 %v942_v38  ;;  %366 = vmatmul.mubr.f32.gmra.mrb[2].mxu1 %v1288_v18  ;;  %v1022_v36 = vpack.c.bf16 %v603_v33, %v601_v31  ;;  %v600_v38 = vld [vmem:[#allocation5 + $0x2e0] sm:$0xff]  ;;  %v621_v31 = vld [vmem:[#allocation5 + $0x388] sm:$0xff]  ;;  %v623_v33 = vld [vmem:[#allocation5 + $0x398] sm:$0xff] }
  0x84   :  { %1001 = vmatpush1.bf16.msra.mxu1 %v1000_v45  ;;  %v1024_v40 = vpack.c.bf16 %v602_v39, %v600_v38  ;;  %v962_v45 = vpack.c.bf16 %v452_v42, %v450_v41  ;;  %v620_v38 = vld [vmem:[#allocation5 + $0x380] sm:$0xff]  ;;  %v622_v39 = vld [vmem:[#allocation5 + $0x390] sm:$0xff]  ;;  %v470_v41 = vld [vmem:[#allocation7 + $0x3a8] sm:$0xff] }
  0x85   :  { %1003 = vmatprep.subr.bf16.mxu1 %v1002_v50  ;;  %v472_v42 = vld [vmem:[#allocation7 + $0x3b8] sm:$0xff]  ;;  %v630_v0 = vld [vmem:[#allocation5 + $0x3d0] sm:$0xff]  ;;  %v632_v13 = vld [vmem:[#allocation5 + $0x3e0] sm:$0xff] }
  0x86   :  { %945 = vmatpush1.bf16.msra.mxu0 %v944_v43  ;;  %v605_v43 = vld [vmem:[#allocation5 + $0x308] sm:$0xff]  ;;  %v479_v10 = vld [vmem:[#allocation7 + $0x3f0] sm:$0xff] }
  0x87   :  { %947 = vmatprep.subr.bf16.mxu0 %v946_v47  ;;  %v449_v47 = vld [vmem:[#allocation7 + $0x300] sm:$0xff]  ;;  %v1026_v49 = vpack.c.bf16 %v607_v46, %v605_v43  ;;  %v982_v43 = vpack.c.bf16 %v472_v42, %v470_v41  ;;  %v627_v46 = vld [vmem:[#allocation5 + $0x3b8] sm:$0xff]  ;;  %v634_v14 = vld [vmem:[#allocation5 + $0x3f0] sm:$0xff] }
  0x88   :  { %1005 = vmatpush1.bf16.msra.mxu1 %v1004_v57  ;;  %v964_v50 = vpack.c.bf16 %v451_v48, %v449_v47  ;;  %v966_v57 = vpack.c.bf16 %v456_v55, %v454_v54  ;;  %v469_v47 = vld [vmem:[#allocation7 + $0x3a0] sm:$0xff]  ;;  %v474_v54 = vld [vmem:[#allocation7 + $0x3c8] sm:$0xff]  ;;  %v476_v55 = vld [vmem:[#allocation7 + $0x3d8] sm:$0xff] }
  0x89   :  { %1007 = vmatprep.subr.bf16.mxu1 %v1006_v62 }
  0x8a   :  { %949 = vmatpush1.bf16.msra.mxu0 %v948_v56  ;;  %v609_v56 = vld [vmem:[#allocation5 + $0x328] sm:$0xff] }
  0x8b   :  { %951 = vmatprep.subr.bf16.mxu0 %v950_v59  ;;  %v453_v59 = vld [vmem:[#allocation7 + $0x320] sm:$0xff]  ;;  %v1030_v61 = vpack.c.bf16 %v611_v58, %v609_v56  ;;  %v629_v56 = vld [vmem:[#allocation5 + $0x3c8] sm:$0xff]  ;;  %v631_v58 = vld [vmem:[#allocation5 + $0x3d8] sm:$0xff] }
  0x8c   :  { %1009 = vmatpush1.bf16.msra.mxu1 %v1008_v7  ;;  %v968_v62 = vpack.c.bf16 %v455_v60, %v453_v59  ;;  %v970_v7 = vpack.c.bf16 %v460_v3, %v458_v2  ;;  %v473_v59 = vld [vmem:[#allocation7 + $0x3c0] sm:$0xff]  ;;  %v475_v60 = vld [vmem:[#allocation7 + $0x3d0] sm:$0xff]  ;;  %v478_v2 = vld [vmem:[#allocation7 + $0x3e8] sm:$0xff] }
  0x8d   :  { %1011 = vmatprep.subr.bf16.mxu1 %v1010_v11  ;;  %v480_v3 = vld [vmem:[#allocation7 + $0x3f8] sm:$0xff] }
  0x8e   :  { %953 = vmatpush1.bf16.msra.mxu0 %v952_v6  ;;  %v613_v6 = vld [vmem:[#allocation5 + $0x348] sm:$0xff] }
  0x8f   :  { %955 = vmatprep.subr.bf16.mxu0 %v954_v8  ;;  %v615_v8 = vld [vmem:[#allocation5 + $0x358] sm:$0xff] }
  0x90   :  { %1013 = vmatpush1.bf16.msra.mxu1 %v1012_v17  ;;  %v1034_v11 = vpack.c.bf16 %v615_v8, %v613_v6  ;;  %v464_v17 = vld [vmem:[#allocation7 + $0x378] sm:$0xff]  ;;  %v633_v6 = vld [vmem:[#allocation5 + $0x3e8] sm:$0xff] }
  0x91   :  { %1015 = vmatprep.subr.bf16.mxu1 %v1014_v19  ;;  %v617_v19 = vld [vmem:[#allocation5 + $0x368] sm:$0xff]  ;;  %v635_v8 = vld [vmem:[#allocation5 + $0x3f8] sm:$0xff] }
  0x92   :  { %957 = vmatpush1.bf16.msra.mxu0 %v956_v16  ;;  %v462_v16 = vld [vmem:[#allocation7 + $0x368] sm:$0xff] }
  0x93   :  { %959 = vmatprep.subr.bf16.mxu0 %v958_v32  ;;  %v974_v20 = vpack.c.bf16 %v464_v17, %v462_v16  ;;  %v978_v32 = vpack.c.bf16 %v468_v30, %v466_v29  ;;  %v132_v16 = vlaneseq }
  0x94   :  { %1017 = vmatpush1.bf16.msra.mxu1 %v1016_v24  ;;  %v1038_v24 = vpack.c.bf16 %v619_v21, %v617_v19 }
  0x95   :  { %1019 = vmatprep.subr.bf16.mxu1 %v1018_v25  ;;  %v976_v25 = vpack.c.bf16 %v463_v23, %v461_v22  ;;  %v133_v17 = vshrl.u32 %v132_v16, 7 }
  0x96   :  { %961 = vmatpush1.bf16.msra.mxu0 %v960_v37  ;;  %v980_v37 = vpack.c.bf16 %v467_v35, %v465_v34 }
  0x97   :  { %963 = vmatprep.subr.bf16.mxu0 %v962_v45  ;;  %v625_v45 = vld [vmem:[#allocation5 + $0x3a8] sm:$0xff]  ;;  %v1294_v19 = vsub.s32 0, %v133_v17  ;;  %v1299_v21 = vsub.s32 1, %v133_v17 }
  0x98   :  { %1021 = vmatpush1.bf16.msra.mxu1 %v1020_v28  ;;  %v1040_v28 = vpack.c.bf16 %v618_v27, %v616_v26  ;;  %v1046_v48 = vpack.c.bf16 %v627_v46, %v625_v45 }
  0x99   :  { %1023 = vmatprep.subr.bf16.mxu1 %v1022_v36  ;;  %v1042_v36 = vpack.c.bf16 %v623_v33, %v621_v31 }
  0x9a   :  { %965 = vmatpush1.bf16.msra.mxu0 %v964_v50  ;;  %v624_v50 = vld [vmem:[#allocation5 + $0x3a0] sm:$0xff] }
  0x9b   :  { %967 = vmatprep.subr.bf16.mxu0 %v966_v57  ;;  %v986_v57 = vpack.c.bf16 %v476_v55, %v474_v54 }
  0x9c   :  { %1025 = vmatpush1.bf16.msra.mxu1 %v1024_v40  ;;  %v1044_v40 = vpack.c.bf16 %v622_v39, %v620_v38  ;;  %v283_v39 = vld [vmem:[%s1359_s2] sm:$0x3] }
  0x9d   :  { %1027 = vmatprep.subr.bf16.mxu1 %v1026_v49  ;;  %v471_v49 = vld [vmem:[#allocation7 + $0x3b0] sm:$0xff]  ;;  %v288_v46 = vrot.slane %v283_v39, %v1294_v19 }
  0x9e   :  { %969 = vmatpush1.bf16.msra.mxu0 %v968_v62  ;;  %v984_v52 = vpack.c.bf16 %v471_v49, %v469_v47  ;;  %v988_v62 = vpack.c.bf16 %v475_v60, %v473_v59  ;;  %v292_v47 = vrot.slane %v283_v39, %v1299_v21  ;;  %v797_v39 = vld [vmem:[%s1359_s2 + $0x2] sm:$0x3]  ;;  %s1195_s2 = smov [#allocation8]  }
  0x9f   :  { %971 = vmatprep.subr.bf16.mxu0 %v970_v7  ;;  %v990_v7 = vpack.c.bf16 %v480_v3, %v478_v2  ;;  %s779_s12 = sshll.u32 %s1195_s2, 4  ;;  %s780_s12 = int_to_ptr.vmem [resolvable:$true] %s779_s12 }
  0xa0   :  { %1029 = vmatpush1.bf16.msra.mxu1 %v1028_v53  ;;  %v1048_v53 = vpack.c.bf16 %v626_v51, %v624_v50  ;;  %s1162_s13 = scalar_lea.vmem %s780_s12, 512  ;;  %p1167_p11 = scmp.lt.s32.totalorder %s780_s12, %s780_s12 }
  0xa1   :  { %1031 = vmatprep.subr.bf16.mxu1 %v1030_v61  ;;  %v1050_v61 = vpack.c.bf16 %v631_v58, %v629_v56  ;;  %p1163_p10 = scmp.ne.s32.totalorder %s780_s12, %s1162_s13  ;;  %p1168_p12 = scmp.lt.s32.totalorder %s1162_s13, %s1162_s13 }
  0xa2   :  { %973 = vmatpush1.bf16.msra.mxu0 %v972_v12  ;;  %v992_v12 = vpack.c.bf16 %v479_v10, %v477_v9 }
  0xa3   :  { %975 = vmatprep.subr.bf16.mxu0 %v974_v20  ;;  %v130_v20 = vld [vmem:[%s1361_s4] sm:$0x3]  ;;  %p1169_p13 = por %p1168_p12, %p1167_p11 }
  0xa4   :  { %1033 = vmatpush1.bf16.msra.mxu1 %v1032_v1  ;;  %v1052_v1 = vpack.c.bf16 %v630_v0, %v628_v63  ;;  %v135_v22 = vrot.slane %v130_v20, %v1294_v19  ;;  %v139_v23 = vrot.slane %v130_v20, %v1299_v21 }
  0xa5   :  { %1035 = vmatprep.subr.bf16.mxu1 %v1034_v11  ;;  %v1054_v11 = vpack.c.bf16 %v635_v8, %v633_v6  ;;  %p1170_p0 = pnand %p1169_p13, %p1163_p10 }
  0xa6   :  { %977 = vmatpush1.bf16.msra.mxu0 %v976_v25 }
  0xa7   :  { %979 = vmatprep.subr.bf16.mxu0 %v978_v32 }
  0xa8   :  { %1037 = vmatpush1.bf16.msra.mxu1 %v1036_v15  ;;  %v1056_v15 = vpack.c.bf16 %v634_v14, %v632_v13 }
  0xa9   :  { %1039 = vmatprep.subr.bf16.mxu1 %v1038_v24 }
  0xaa   :  { %981 = vmatpush1.bf16.msra.mxu0 %v980_v37 }
  0xab   :  { %983 = vmatprep.subr.bf16.mxu0 %v982_v43 }
  0xac   :  { %1041 = vmatpush1.bf16.msra.mxu1 %v1040_v28 }
  0xad   :  { %1043 = vmatprep.subr.bf16.mxu1 %v1042_v36 }
  0xae   :  { %985 = vmatpush1.bf16.msra.mxu0 %v984_v52 }
  0xaf   :  { %987 = vmatprep.subr.bf16.mxu0 %v986_v57 }
  0xb0   :  { %1045 = vmatpush1.bf16.msra.mxu1 %v1044_v40 }
  0xb1   :  { %1047 = vmatprep.subr.bf16.mxu1 %v1046_v48 }
  0xb2   :  { %989 = vmatpush1.bf16.msra.mxu0 %v988_v62 }
  0xb3   :  { %991 = vmatprep.subr.bf16.mxu0 %v990_v7 }
  0xb4   :  { %1049 = vmatpush1.bf16.msra.mxu1 %v1048_v53 }
  0xb5   :  { %1051 = vmatprep.subr.bf16.mxu1 %v1050_v61 }
  0xb6   :  { %993 = vmatpush1.bf16.msra.mxu0 %v992_v12 }
  0xb8   :  { %1053 = vmatpush1.bf16.msra.mxu1 %v1052_v1 }
  0xb9   :  { %1055 = vmatprep.subr.bf16.mxu1 %v1054_v11 }
  0xbc   :  { %1057 = vmatpush1.bf16.msra.mxu1 %v1056_v15 }
 0x14c   :  { %v208_v24 = vpop.f32.mrb[0].mxu0 }
 0x14d   :  { %v209_v25 = vadd.f32 %v208_v24, %v135_v22  ;;  %v210_v26 = vpop.f32.mrb[1].mxu0 }
 0x14e   :  { %v211_v27 = vadd.f32 %v210_v26, %v139_v23 }
 0x14f   :  { %v792_v28 = vmul.f32 -1.442695, %v209_v25 }
 0x150   :  { %v793_v29 = vmul.f32 -1.442695, %v211_v27  ;;  %v214_v30 = vpop.f32.mrb[2].mxu0 }
 0x151   :  { %1064 = vpow2.f32 %v792_v28  ;;  %v215_v31 = vadd.f32 %v214_v30, %v135_v22  ;;  %v216_v32 = vpop.f32.mrb[3].mxu0 }
 0x152   :  { %1066 = vpow2.f32 %v793_v29  ;;  %v217_v33 = vadd.f32 %v216_v32, %v139_v23  ;;  %v361_v36 = vpop.f32.mrb[0].mxu1 }
 0x153   :  { %v794_v34 = vmul.f32 -1.442695, %v215_v31  ;;  %v363_v37 = vpop.f32.mrb[1].mxu1  ;;  %v362_v52 = vadd.f32 %v361_v36, %v288_v46 }
 0x154   :  { %v795_v35 = vmul.f32 -1.442695, %v217_v33  ;;  %v364_v53 = vadd.f32 %v363_v37, %v292_v47 }
 0x155   :  { %1068 = vpow2.f32 %v794_v34  ;;  %v396_v54 = vmax.f32 %v362_v52, 0.0 }
 0x156   :  { %1070 = vpow2.f32 %v795_v35  ;;  %v367_v38 = vpop.f32.mrb[2].mxu1  ;;  %v397_v56 = vmax.f32 %v364_v53, 0.0 }
 0x157   :  { %v369_v40 = vpop.f32.mrb[3].mxu1  ;;  %v368_v55 = vadd.f32 %v367_v38, %v288_v46 }
 0x158   :  { %v370_v57 = vadd.f32 %v369_v40, %v292_v47 }
 0x159   :  { %v398_v62 = vmax.f32 %v368_v55, 0.0 }
 0x15a   :  { %v399_v0 = vmax.f32 %v370_v57, 0.0 }
 0x15b   :  { %v1065_v41 = vpop.eup %1064 }
 0x15c   :  { %v1067_v42 = vpop.eup %1066  ;;  %v384_v43 = vadd.f32 1.0, %v1065_v41 }
 0x15d   :  { %v385_v45 = vadd.f32 1.0, %v1067_v42  ;;  %v642_v42 = vrot.slane %v797_v39, %v1294_v19 }
 0x15e   :  { %1072 = vrcp.f32 %v384_v43 }
 0x15f   :  { %v1069_v48 = vpop.eup %1068  ;;  %1074 = vrcp.f32 %v385_v45  ;;  %v646_v45 = vrot.slane %v797_v39, %v1299_v21 }
 0x160   :  { %v1071_v49 = vpop.eup %1070  ;;  %v386_v50 = vadd.f32 1.0, %v1069_v48 }
 0x161   :  { %v387_v51 = vadd.f32 1.0, %v1071_v49 }
 0x162   :  { %1076 = vrcp.f32 %v386_v50 }
 0x163   :  { %1078 = vrcp.f32 %v387_v51 }
 0x168   :  { %v1073_v58 = vpop.eup %1072 }
 0x169   :  { %v1075_v59 = vpop.eup %1074  ;;  %v400_v60 = vmul.f32 %v1073_v58, %v396_v54  ;;  %v404_v61 = vsub.f32 1.0, %v1073_v58 }
 0x16a   :  { %v401_v63 = vmul.f32 %v1075_v59, %v397_v56  ;;  %v405_v1 = vsub.f32 1.0, %v1075_v59 }
 0x16b   :  { %v408_v2 = vmul.f32 %v404_v61, %v1282_v4 }
 0x16c   :  { %v1077_v3 = vpop.eup %1076  ;;  %v409_v6 = vmul.f32 %v405_v1, %v1278_v44 }
 0x16d   :  { %v1079_v7 = vpop.eup %1078  ;;  %v1310_v8 = vadd.f32 %v408_v2, %v400_v60  ;;  %v402_v9 = vmul.f32 %v1077_v3, %v398_v62  ;;  %v406_v10 = vsub.f32 1.0, %v1077_v3 }
 0x16e   :  { %v403_v11 = vmul.f32 %v1079_v7, %v399_v0  ;;  %v1312_v12 = vadd.f32 %v409_v6, %v401_v63  ;;  %v407_v13 = vsub.f32 1.0, %v1079_v7 }
 0x16f   :  { %v410_v14 = vmul.f32 %v406_v10, %v1288_v18 }
 0x170   :  { %558 = vmatprep.mubr.f32.mxu0 %v1312_v12  ;;  %713 = vmatprep.mubr.f32.mxu1 %v1312_v12  ;;  %v411_v4 = vmul.f32 %v407_v13, %v1284_v5  ;;  %v796_v5 = vld [vmem:[%s1361_s4 + $0x2] sm:$0x3] }
 0x171   :  { %559 = vmatmul.mubr.f32.vlgmr.msra.gmra.mrb[4].mxu0 %v1310_v8  ;;  %714 = vmatmul.mubr.f32.vlgmr.msra.gmra.mrb[4].mxu1 %v1310_v8  ;;  %v1320_v44 = vadd.f32 %v410_v14, %v402_v9  ;;  %v487_v18 = vrot.slane %v796_v5, %v1294_v19  ;;  %v491_v16 = vrot.slane %v796_v5, %v1299_v21 }
 0x172   :  { %v1322_v15 = vadd.f32 %v411_v4, %v403_v11 }
 0x174   :  { %564 = vmatprep.mubr.f32.mxu0 %v1322_v15  ;;  %719 = vmatprep.mubr.f32.mxu1 %v1322_v15 }
 0x175   :  { %565 = vmatmul.mubr.f32.gmra.mrb[6].mxu0 %v1320_v44  ;;  %720 = vmatmul.mubr.f32.gmra.mrb[6].mxu1 %v1320_v44 }
 0x244   :  { %v560_v17 = vpop.f32.mrb[4].mxu0  ;;  %v715_v20 = vpop.f32.mrb[4].mxu1 }
 0x245   :  { %v561_v22 = vadd.f32 %v560_v17, %v487_v18  ;;  %v562_v23 = vpop.f32.mrb[5].mxu0  ;;  %v717_v24 = vpop.f32.mrb[5].mxu1  ;;  %v716_v48 = vadd.f32 %v715_v20, %v642_v42 }
 0x246   :  { %v563_v25 = vadd.f32 %v562_v23, %v491_v16  ;;  %v718_v49 = vadd.f32 %v717_v24, %v646_v45 }
 0x247   :  { %v798_v26 = vmul.f32 -1.442695, %v561_v22  ;;  %v750_v50 = vmax.f32 %v716_v48, 0.0 }
 0x248   :  { %v799_v27 = vmul.f32 -1.442695, %v563_v25  ;;  %v566_v28 = vpop.f32.mrb[6].mxu0  ;;  %v721_v29 = vpop.f32.mrb[6].mxu1  ;;  %v751_v53 = vmax.f32 %v718_v49, 0.0 }
 0x249   :  { %1080 = vpow2.f32 %v798_v26  ;;  %v567_v30 = vadd.f32 %v566_v28, %v487_v18  ;;  %v568_v31 = vpop.f32.mrb[7].mxu0  ;;  %v723_v32 = vpop.f32.mrb[7].mxu1  ;;  %v722_v51 = vadd.f32 %v721_v29, %v642_v42 }
 0x24a   :  { %1082 = vpow2.f32 %v799_v27  ;;  %v569_v33 = vadd.f32 %v568_v31, %v491_v16  ;;  %v724_v54 = vadd.f32 %v723_v32, %v646_v45 }
 0x24b   :  { %v800_v34 = vmul.f32 -1.442695, %v567_v30  ;;  %v752_v60 = vmax.f32 %v722_v51, 0.0 }
 0x24c   :  { %v801_v35 = vmul.f32 -1.442695, %v569_v33  ;;  %v753_v62 = vmax.f32 %v724_v54, 0.0 }
 0x24d   :  { %1084 = vpow2.f32 %v800_v34 }
 0x24e   :  { %1086 = vpow2.f32 %v801_v35 }
 0x253   :  { %v1081_v36 = vpop.eup %1080 }
 0x254   :  { %v1083_v37 = vpop.eup %1082  ;;  %v738_v38 = vadd.f32 1.0, %v1081_v36 }
 0x255   :  { %v739_v40 = vadd.f32 1.0, %v1083_v37 }
 0x256   :  { %1088 = vrcp.f32 %v738_v38 }
 0x257   :  { %v1085_v41 = vpop.eup %1084  ;;  %1090 = vrcp.f32 %v739_v40 }
 0x258   :  { %v1087_v43 = vpop.eup %1086  ;;  %v740_v46 = vadd.f32 1.0, %v1085_v41 }
 0x259   :  { %v741_v47 = vadd.f32 1.0, %v1087_v43 }
 0x25a   :  { %1092 = vrcp.f32 %v740_v46 }
 0x25b   :  { %1094 = vrcp.f32 %v741_v47 }
 0x260   :  { %v1089_v52 = vpop.eup %1088 }
 0x261   :  { %v1091_v55 = vpop.eup %1090  ;;  %v754_v56 = vmul.f32 %v1089_v52, %v750_v50  ;;  %v758_v57 = vsub.f32 1.0, %v1089_v52 }
 0x262   :  { %v755_v58 = vmul.f32 %v1091_v55, %v751_v53  ;;  %v759_v19 = vsub.f32 1.0, %v1091_v55 }
 0x263   :  { %v762_v59 = vmul.f32 %v758_v57, %v1310_v8 }
 0x264   :  { %v1093_v21 = vpop.eup %1092  ;;  %v763_v61 = vmul.f32 %v759_v19, %v1312_v12 }
 0x265   :  { %v1095_v63 = vpop.eup %1094  ;;  %v766_v0 = vadd.f32 %v762_v59, %v754_v56  ;;  %v756_v1 = vmul.f32 %v1093_v21, %v752_v60  ;;  %v760_v2 = vsub.f32 1.0, %v1093_v21 }
 0x266   :  { %v767_v3 = vadd.f32 %v763_v61, %v755_v58  ;;  %v757_v6 = vmul.f32 %v1095_v63, %v753_v62  ;;  %v761_v7 = vsub.f32 1.0, %v1095_v63 }
 0x267   :  { %770 = vst [vmem:[#allocation8] sm:$0xff] %v766_v0  ;;  %v764_v9 = vmul.f32 %v760_v2, %v1320_v44 }
 0x268   :  { %771 = vst [vmem:[#allocation8 + $0x8] sm:$0xff] %v767_v3  ;;  %v765_v8 = vmul.f32 %v761_v7, %v1322_v15 }
 0x269   :  { %v768_v10 = vadd.f32 %v764_v9, %v756_v1 }
 0x26a   :  { %v769_v11 = vadd.f32 %v765_v8, %v757_v6 }
 0x26b   :  { %772 = vst [vmem:[#allocation8 + $0x10] sm:$0xff] %v768_v10 }
 0x26c   :  { %773 = vst [vmem:[#allocation8 + $0x18] sm:$0xff] %v769_v11 }
 0x26d   :  { %1173 = shalt.err (!%p1170_p0)
}
 0x26e   :  { %s1174_s16 = scalar_lea.hbm %s1362_s5, 512 }
 0x26f   :  { %p1175_p1 = scmp.ne.s32.totalorder %s1362_s5, %s1174_s16  ;;  %p1178_p2 = scmp.lt.u32.totalorder %s1174_s16, %s1362_s5 }
 0x271   :  { %p1180_p3 = pnand %p1178_p2, %p1175_p1 }
 0x273   :  { %1183 = shalt.err (!%p1180_p3)
}
 0x274   :  { %785 = dma.vmem_to_hbm [thread:$0]  %s780_s12, 512, %s1362_s5, [#allocation4], %s1192_s30, %s1192_s30, %s1193_s6  }
 0x275   :  { %1188 = dma.done.wait [#allocation4], 512  }
 0x276   :  { %1189 = vsyncadd [#allocation4], 4294966784 }
 0x277   :  { %789 = vsyncpa [#allocation3], 1 }
 0x278   :  { %790 = vsyncpa [#allocation6], 1 }
 0x279   :  { %791 = vsyncpa [#allocation4], 1 }

</bundles_post_ra>
